<compile_context>
chip_gen: v6e
topology: v6e:2x2x1
jax: 0.10.0
libtpu: 0.0.40
codegen_flags: <defaults>
</compile_context>

<pallas_src>
import functools

import jax
import jax.numpy as jnp
from jax.experimental import pallas as pl
from jax.experimental.pallas import tpu as pltpu


_LANES = 128


def _blend_weights_kernel(p2f_ref, dists_ref, zbuf_ref, w_ref, alpha_ref,
                          *, inv_sigma, inv_gamma, zfar, inv_zrange, eps):
    """Soft-Rasterizer per-pixel blend scalars, pixels dense on (sublanes, lanes).

    Block shapes:
      p2f / dists / zbuf / w : (K, TR, 128)
      alpha                  : (TR, 128)
    Emits  w_k/denom  and  1 - alpha.   (delta/denom == 1 - sum_k w_k/denom,
    recovered in the epilogue -- no separate background-weight store.)
    """
    K = p2f_ref.shape[0]

    p2f = p2f_ref[...]                                           # (K, TR, 128) i32
    dists = dists_ref[...]                                       # (K, TR, 128) f32
    zbuf = zbuf_ref[...]                                         # (K, TR, 128) f32

    mask = (p2f >= 0).astype(jnp.float32)                        # (K, TR, 128)
    # sigmoid(x) == 0.5*(1 + tanh(x/2)): one EUP tanh instead of exp (+divide).
    prob = (0.5 - 0.5 * jnp.tanh(dists * (0.5 * inv_sigma))) * mask
    z_inv = (zfar - zbuf) * inv_zrange * mask                    # (K, TR, 128)

    # K is tiny and static -> unrolled elementwise reductions over the leading
    # (non-vreg) axis; full-vreg VPU ops only.
    one_m = 1.0 - prob
    alpha = one_m[0]
    for k in range(1, K):
        alpha = alpha * one_m[k]

    if K == 1:
        # z_max = max(z_inv, eps), so exactly one of (z_inv - z_max) and
        # (eps - z_max) is nonzero.  One exp(-|t|) + two selects reproduces
        # both exps exactly (w_num scale and delta).
        t = (z_inv[0] - eps) * inv_gamma                          # (TR, 128)
        e = jnp.exp(-jnp.abs(t))
        neg = t < 0.0
        w_num0 = prob[0] * jnp.where(neg, e, 1.0)
        delta = jnp.maximum(jnp.where(neg, 1.0, e), eps)
        denom = w_num0 + delta
        w_num = w_num0[None]                                      # (1, TR, 128)
    else:
        z_max = z_inv[0]
        for k in range(1, K):
            z_max = jnp.maximum(z_max, z_inv[k])
        z_max = jnp.maximum(z_max, eps)                           # (TR, 128)
        w_num = prob * jnp.exp((z_inv - z_max[None]) * inv_gamma)
        delta = jnp.maximum(jnp.exp((eps - z_max) * inv_gamma), eps)
        denom = w_num[0]
        for k in range(1, K):
            denom = denom + w_num[k]
        denom = denom + delta

    # EUP approx reciprocal + one Newton-Raphson step on the VPU; denom >= eps
    # so this stays ~f32-accurate even for near-empty pixels.
    r = pl.reciprocal(denom, approx=True)
    inv_denom = r * (2.0 - denom * r)

    # Direct stores -- no in-kernel concatenate / relayout.
    w_ref[...] = w_num * inv_denom[None]
    alpha_ref[...] = 1.0 - alpha


def _vmem_budget_bytes():
    """Per-generation budget for one grid step's (double-buffered) blocks."""
    try:
        info = pltpu.get_tpu_info()
        cap = int(getattr(info, "vmem_capacity_bytes", 0) or 0)
        if cap > 0:
            # Keep well under physical/scoped VMEM: 16 MiB on v7x (64 MiB phys),
            # 24 MiB on v5e/v6e (128 MiB phys).
            return min(cap // 4, 24 << 20)
    except Exception:
        pass
    return 12 << 20


def _tensorcores_per_device():
    """Best-effort TC count (grid-split only helps on multi-TC chips)."""
    try:
        dev = jax.devices()[0]
        nc = getattr(dev, "num_cores", None)
        if nc:
            return int(nc)
        kind = str(getattr(dev, "device_kind", "")).lower()
        if any(tag in kind for tag in ("v2", "v3", "v4", "v5p", "v7", "7x")):
            return 2
    except Exception:
        pass
    return 1


def _choose_tile_rows(rows, K):
    """Rows of 128 pixels per grid step + vmem_limit_bytes to hand the compiler.

    Big tiles amortize the ~0.35 us per-grid-step overhead; the candidate list
    tops out at 2048 rows (262144 px, ~10 MiB incl. double-buffering at K=1),
    which fits every generation's scoped VMEM once vmem_limit_bytes is set.
    """
    # 3 fragment inputs + w output per K-slice + alpha, double-buffered.
    bytes_per_row = (4 * K + 1) * _LANES * 4 * 2
    budget = _vmem_budget_bytes()
    tr = 8
    for cand in (2048, 1024, 512, 256, 128, 64, 32, 16, 8):
        if cand * bytes_per_row <= budget:
            tr = cand
            break
    # Multi-TensorCore chips: prefer >= 4 steps on the "parallel" axis so both
    # cores get >= 2 steps to pipeline, but never shrink below 512 rows
    # (65536 px) -- below that the per-step overhead dominates again.
    if _tensorcores_per_device() >= 2:
        while tr > 512 and pl.cdiv(rows, tr) < 4:
            tr //= 2
    # Don't make the block (much) larger than the whole problem.
    if rows <= 8:
        tr = rows
    else:
        tr = min(tr, ((rows + 7) // 8) * 8)
    footprint = tr * bytes_per_row
    vmem_limit = int(min(max(2 * footprint, 16 << 20), 32 << 20))
    return tr, vmem_limit


def softmax_rgb_blend_pallas(colors, pix_to_face, dists, zbuf, background,
                             *, sigma=1e-4, gamma=1e-4, znear=1.0, zfar=100.0):
    """Pallas softmax_rgb_blend.  colors: (N,H,W,K,C) -> returns (N,H,W,C+1)."""
    N, H, W, K = pix_to_face.shape
    C = colors.shape[-1]
    P = N * H * W
    eps = 1e-10

    # --- relayout fragments to (K, rows, 128): pixels fill sublanes + lanes.
    # For the module's faces_per_pixel == 1 the moveaxis is a pure reshape
    # (no HBM pass); colors and the output are never transposed at all.
    # TODO(synk): for K > 1 fold the K stride into the BlockSpec index_map
    # instead of transposing here (it becomes a real HBM transpose pass).
    def planar(x, dtype):
        return jnp.moveaxis(x.reshape(P, K).astype(dtype), -1, 0)   # (K, P)

    p2f_p = planar(pix_to_face, jnp.int32)
    d_p = planar(dists, jnp.float32)
    z_p = planar(zbuf, jnp.float32)

    rows = pl.cdiv(P, _LANES)
    p128 = rows * _LANES
    if p128 != P:
        # Pad only to the next multiple of 128 (<= 127 px; rare -- renderer
        # images are 128-aligned).  Raggedness at the row-block level is
        # handled by the Pallas runtime: tail-row reads are garbage but stay
        # lane-local (all reductions are over the leading K axis) and OOB
        # writes are dropped, so no full-array pad copy is ever needed.
        pad = ((0, 0), (0, p128 - P))
        p2f_p = jnp.pad(p2f_p, pad, constant_values=-1)
        d_p = jnp.pad(d_p, pad)
        z_p = jnp.pad(z_p, pad)
    p2f_p = p2f_p.reshape(K, rows, _LANES)
    d_p = d_p.reshape(K, rows, _LANES)
    z_p = z_p.reshape(K, rows, _LANES)

    tr, vmem_limit = _choose_tile_rows(rows, K)
    grid = (pl.cdiv(rows, tr),)

    kernel = functools.partial(
        _blend_weights_kernel,
        inv_sigma=float(1.0 / sigma), inv_gamma=float(1.0 / gamma),
        zfar=float(zfar), inv_zrange=float(1.0 / (zfar - znear)), eps=eps)

    frag_spec = pl.BlockSpec((K, tr, _LANES), lambda i: (0, i, 0))
    pix_spec = pl.BlockSpec((tr, _LANES), lambda i: (i, 0))

    cost = pl.CostEstimate(
        flops=int(25 * P * K),
        transcendentals=int(3 * P * K),
        bytes_accessed=int(P * (3 * K * 4 + K * 4 + 4)))

    w_s, alpha_c = pl.pallas_call(
        kernel,
        out_shape=(
            jax.ShapeDtypeStruct((K, rows, _LANES), jnp.float32),
            jax.ShapeDtypeStruct((rows, _LANES), jnp.float32),
        ),
        grid_spec=pltpu.PrefetchScalarGridSpec(
            num_scalar_prefetch=0,
            grid=grid,
            in_specs=[frag_spec, frag_spec, frag_spec],
            out_specs=[frag_spec, pix_spec],
        ),
        compiler_params=pltpu.CompilerParams(
            dimension_semantics=("parallel",),
            vmem_limit_bytes=vmem_limit),
        cost_estimate=cost,
    )(p2f_p, d_p, z_p)

    # --- epilogue: one XLA-fused elementwise pass in the native (N,H,W,K,C)
    # layout (tiny K/C broadcasts), writing (N,H,W,C+1) directly.  No HBM
    # transposes of colors or the output.  (moveaxis is free for K == 1.)
    w_s = jnp.moveaxis(w_s.reshape(K, p128)[:, :P], 0, -1).reshape(N, H, W, K)
    alpha_c = alpha_c.reshape(p128)[:P].reshape(N, H, W, 1)
    bg_s = 1.0 - jnp.sum(w_s, axis=-1, keepdims=True)        # == delta / denom

    bg = jnp.asarray(background, jnp.float32).reshape(1, 1, 1, C)
    rgb = jnp.sum(w_s[..., None] * colors.astype(jnp.float32), axis=-2) + bg_s * bg
    return jnp.concatenate([rgb, alpha_c], axis=-1)


class MyRendererPallas:
    """JAX/Pallas counterpart of myRenderer.forward.

    The pytorch3d MeshRasterizer and Meshes.sample_textures stages are host
    data-structure code with no Pallas equivalent, so __call__ consumes the
    precomputed fragments (pix_to_face, dists, zbuf) and sampled texels.
    """
    # TODO(synk): MeshRasterizer / Meshes.sample_textures are not translatable
    # to a Pallas kernel; only the softmax_rgb_blend hot path is implemented.

    def __init__(self, in_channel=3, background_color=None,
                 sigma=1e-4, gamma=1e-4, znear=1.0, zfar=100.0):
        self.in_channel = in_channel
        bg = [0.0] * in_channel if background_color is None else background_color
        self.background = jnp.asarray(bg, dtype=jnp.float32)
        self.sigma, self.gamma = sigma, gamma
        self.znear, self.zfar = znear, zfar

    def __call__(self, texels, pix_to_face, dists, zbuf):
        return softmax_rgb_blend_pallas(
            texels, pix_to_face, dists, zbuf, self.background,
            sigma=self.sigma, gamma=self.gamma,
            znear=self.znear, zfar=self.zfar)


def _softmax_rgb_blend_ref(colors, pix_to_face, dists, zbuf, background,
                           sigma, gamma, znear=1.0, zfar=100.0, eps=1e-10):
    """Pure-JAX reference mirroring the PyTorch function (for verification)."""
    mask = (pix_to_face >= 0).astype(jnp.float32)
    prob_map = jax.nn.sigmoid(-dists / sigma) * mask
    alpha = jnp.prod(1.0 - prob_map, axis=-1)
    z_inv = (zfar - zbuf) / (zfar - znear) * mask
    z_inv_max = jnp.maximum(jnp.max(z_inv, axis=-1, keepdims=True), eps)
    weights_num = prob_map * jnp.exp((z_inv - z_inv_max) / gamma)
    delta = jnp.maximum(jnp.exp((eps - z_inv_max) / gamma), eps)
    denom = jnp.sum(weights_num, axis=-1, keepdims=True) + delta
    weighted_colors = jnp.sum(weights_num[..., None] * colors, axis=-2)
    weighted_background = delta * background
    rgb = (weighted_colors + weighted_background) / denom
    return jnp.concatenate([rgb, (1.0 - alpha)[..., None]], axis=-1)


if __name__ == "__main__":
    # faces_per_pixel = 1 (hard-coded in myRenderer), in_channel = 3.
    N, H, W, K, C = 2, 16, 16, 1, 3
    keys = jax.random.split(jax.random.PRNGKey(0), 8)

    pix_to_face = jax.random.randint(keys[0], (N, H, W, K), -2, 10, dtype=jnp.int32)
    dists = jax.random.uniform(keys[1], (N, H, W, K), minval=-1e-4, maxval=1e-3)
    zbuf = jax.random.uniform(keys[2], (N, H, W, K), minval=1.0, maxval=100.0)
    texels = jax.random.uniform(keys[3], (N, H, W, K, C), dtype=jnp.float32)

    renderer = MyRendererPallas(in_channel=C)
    render = jax.jit(renderer.__call__)

    images = jax.block_until_ready(render(texels, pix_to_face, dists, zbuf))
    ref = _softmax_rgb_blend_ref(texels, pix_to_face, dists, zbuf,
                                 renderer.background,
                                 sigma=renderer.sigma, gamma=renderer.gamma)
    assert images.shape == (N, H, W, C + 1), images.shape
    assert bool(jnp.allclose(images, ref, rtol=1e-5, atol=1e-5)), "mismatch vs reference"

    # Second shape exercising the 128-pad + ragged-last-block path
    # (P = 1600 pixels -> 13 rows of 128, one ragged grid step).
    N2, H2, W2 = 1, 40, 40
    p2f2 = jax.random.randint(keys[4], (N2, H2, W2, K), -2, 10, dtype=jnp.int32)
    d2 = jax.random.uniform(keys[5], (N2, H2, W2, K), minval=-1e-4, maxval=1e-3)
    z2 = jax.random.uniform(keys[6], (N2, H2, W2, K), minval=1.0, maxval=100.0)
    t2 = jax.random.uniform(keys[7], (N2, H2, W2, K, C), dtype=jnp.float32)
    img2 = jax.block_until_ready(render(t2, p2f2, d2, z2))
    ref2 = _softmax_rgb_blend_ref(t2, p2f2, d2, z2, renderer.background,
                                  sigma=renderer.sigma, gamma=renderer.gamma)
    assert img2.shape == (N2, H2, W2, C + 1), img2.shape
    assert bool(jnp.allclose(img2, ref2, rtol=1e-5, atol=1e-5)), "mismatch (ragged path)"

    print("KERNEL_OK")
</pallas_src>

<mosaic_0001>
module attributes {stable_mosaic.version = 11 : i64} {
  func.func @_blend_weights_kernel(%arg0: i32, %arg1: memref<1x4x128xi32, #tpu.memory_space<vmem>>, %arg2: memref<1x4x128xf32, #tpu.memory_space<vmem>>, %arg3: memref<1x4x128xf32, #tpu.memory_space<vmem>>, %arg4: memref<1x4x128xf32, #tpu.memory_space<vmem>>, %arg5: memref<4x128xf32, #tpu.memory_space<vmem>>) attributes {dimension_semantics = [#tpu.dimension_semantics<parallel>], iteration_bounds = array<i64: 1>, scalar_prefetch = 0 : i64, scratch_operands = 0 : i64, tpu.core_type = #tpu.core_type<tc>, window_params = [{transform_indices = @transform_0, window_bounds = array<i64: 1, 4, 128>}, {transform_indices = @transform_1, window_bounds = array<i64: 1, 4, 128>}, {transform_indices = @transform_2, window_bounds = array<i64: 1, 4, 128>}, {transform_indices = @transform_3, window_bounds = array<i64: 1, 4, 128>}, {transform_indices = @transform_4, window_bounds = array<i64: 4, 128>}]} {
    %c0 = arith.constant 0 : index
    %c0_0 = arith.constant 0 : index
    %c0_1 = arith.constant 0 : index
    %0 = vector.load %arg1[%c0, %c0_0, %c0_1] : memref<1x4x128xi32, #tpu.memory_space<vmem>>, vector<1x4x128xi32>
    %c0_2 = arith.constant 0 : index
    %c0_3 = arith.constant 0 : index
    %c0_4 = arith.constant 0 : index
    %1 = vector.load %arg2[%c0_2, %c0_3, %c0_4] : memref<1x4x128xf32, #tpu.memory_space<vmem>>, vector<1x4x128xf32>
    %c0_5 = arith.constant 0 : index
    %c0_6 = arith.constant 0 : index
    %c0_7 = arith.constant 0 : index
    %2 = vector.load %arg3[%c0_5, %c0_6, %c0_7] : memref<1x4x128xf32, #tpu.memory_space<vmem>>, vector<1x4x128xf32>
    %c0_i32 = arith.constant 0 : i32
    %3 = vector.broadcast %c0_i32 : i32 to vector<1x4x128xi32>
    %4 = arith.cmpi sge, %0, %3 : vector<1x4x128xi32>
    %5 = arith.extui %4 : vector<1x4x128xi1> to vector<1x4x128xi32>
    %6 = arith.sitofp %5 : vector<1x4x128xi32> to vector<1x4x128xf32>
    %cst = arith.constant 5.000000e+03 : f32
    %7 = vector.broadcast %cst : f32 to vector<1x4x128xf32>
    %8 = arith.mulf %1, %7 : vector<1x4x128xf32>
    %9 = math.tanh %8 : vector<1x4x128xf32>
    %cst_8 = arith.constant 5.000000e-01 : f32
    %10 = vector.broadcast %cst_8 : f32 to vector<1x4x128xf32>
    %11 = arith.mulf %10, %9 : vector<1x4x128xf32>
    %cst_9 = arith.constant 5.000000e-01 : f32
    %12 = vector.broadcast %cst_9 : f32 to vector<1x4x128xf32>
    %13 = arith.subf %12, %11 : vector<1x4x128xf32>
    %14 = arith.mulf %13, %6 : vector<1x4x128xf32>
    %cst_10 = arith.constant 1.000000e+02 : f32
    %15 = vector.broadcast %cst_10 : f32 to vector<1x4x128xf32>
    %16 = arith.subf %15, %2 : vector<1x4x128xf32>
    %cst_11 = arith.constant 0.0101010101 : f32
    %17 = vector.broadcast %cst_11 : f32 to vector<1x4x128xf32>
    %18 = arith.mulf %16, %17 : vector<1x4x128xf32>
    %19 = arith.mulf %18, %6 : vector<1x4x128xf32>
    %cst_12 = arith.constant 1.000000e+00 : f32
    %20 = vector.broadcast %cst_12 : f32 to vector<1x4x128xf32>
    %21 = arith.subf %20, %14 : vector<1x4x128xf32>
    %22 = vector.shape_cast %21 : vector<1x4x128xf32> to vector<4x128xf32>
    %23 = vector.shape_cast %19 : vector<1x4x128xf32> to vector<4x128xf32>
    %cst_13 = arith.constant 1.000000e-10 : f32
    %24 = vector.broadcast %cst_13 : f32 to vector<4x128xf32>
    %25 = arith.subf %23, %24 : vector<4x128xf32>
    %cst_14 = arith.constant 1.000000e+04 : f32
    %26 = vector.broadcast %cst_14 : f32 to vector<4x128xf32>
    %27 = arith.mulf %25, %26 : vector<4x128xf32>
    %28 = math.absf %27 : vector<4x128xf32>
    %cst_15 = arith.constant 0.000000e+00 : f32
    %29 = vector.broadcast %cst_15 : f32 to vector<4x128xf32>
    %30 = arith.subf %29, %28 : vector<4x128xf32>
    %31 = math.exp %30 : vector<4x128xf32>
    %cst_16 = arith.constant 0.000000e+00 : f32
    %32 = vector.broadcast %cst_16 : f32 to vector<4x128xf32>
    %33 = arith.cmpf olt, %27, %32 : vector<4x128xf32>
    %34 = vector.shape_cast %14 : vector<1x4x128xf32> to vector<4x128xf32>
    %cst_17 = arith.constant 1.000000e+00 : f32
    %35 = vector.broadcast %cst_17 : f32 to vector<4x128xf32>
    %36 = arith.select %33, %31, %35 : vector<4x128xi1>, vector<4x128xf32>
    %37 = arith.mulf %34, %36 : vector<4x128xf32>
    %cst_18 = arith.constant 1.000000e+00 : f32
    %38 = vector.broadcast %cst_18 : f32 to vector<4x128xf32>
    %39 = arith.select %33, %38, %31 : vector<4x128xi1>, vector<4x128xf32>
    %cst_19 = arith.constant 1.000000e-10 : f32
    %40 = vector.broadcast %cst_19 : f32 to vector<4x128xf32>
    %41 = arith.maximumf %39, %40 : vector<4x128xf32>
    %42 = arith.addf %37, %41 : vector<4x128xf32>
    %43 = vector.shape_cast %37 : vector<4x128xf32> to vector<1x4x128xf32>
    %44 = tpu.reciprocal %42 {approx = true} : vector<4x128xf32> -> vector<4x128xf32>
    %45 = arith.mulf %42, %44 : vector<4x128xf32>
    %cst_20 = arith.constant 2.000000e+00 : f32
    %46 = vector.broadcast %cst_20 : f32 to vector<4x128xf32>
    %47 = arith.subf %46, %45 : vector<4x128xf32>
    %48 = arith.mulf %44, %47 : vector<4x128xf32>
    %49 = vector.shape_cast %48 : vector<4x128xf32> to vector<1x4x128xf32>
    %50 = arith.mulf %43, %49 : vector<1x4x128xf32>
    %c0_21 = arith.constant 0 : index
    %c0_22 = arith.constant 0 : index
    %c0_23 = arith.constant 0 : index
    %51 = vector.load %arg4[%c0_21, %c0_22, %c0_23] : memref<1x4x128xf32, #tpu.memory_space<vmem>>, vector<1x4x128xf32>
    tpu.vector_store %arg4[%c0_21, %c0_22, %c0_23], %50 {strides = array<i32>} : memref<1x4x128xf32, #tpu.memory_space<vmem>>, vector<1x4x128xf32>,
    %cst_24 = arith.constant 1.000000e+00 : f32
    %52 = vector.broadcast %cst_24 : f32 to vector<4x128xf32>
    %53 = arith.subf %52, %22 : vector<4x128xf32>
    %c0_25 = arith.constant 0 : index
    %c0_26 = arith.constant 0 : index
    %54 = vector.load %arg5[%c0_25, %c0_26] : memref<4x128xf32, #tpu.memory_space<vmem>>, vector<4x128xf32>
    tpu.vector_store %arg5[%c0_25, %c0_26], %53 {strides = array<i32>} : memref<4x128xf32, #tpu.memory_space<vmem>>, vector<4x128xf32>,
    return
  }
  func.func @transform_0(%arg0: i32) -> (i32, i32, i32) {
    %c0_i32 = arith.constant 0 : i32
    %c0_i32_0 = arith.constant 0 : i32
    %c0_i32_1 = arith.constant 0 : i32
    return %c0_i32, %arg0, %c0_i32_0 : i32, i32, i32
  }
  func.func @transform_1(%arg0: i32) -> (i32, i32, i32) {
    %c0_i32 = arith.constant 0 : i32
    %c0_i32_0 = arith.constant 0 : i32
    %c0_i32_1 = arith.constant 0 : i32
    return %c0_i32, %arg0, %c0_i32_0 : i32, i32, i32
  }
  func.func @transform_2(%arg0: i32) -> (i32, i32, i32) {
    %c0_i32 = arith.constant 0 : i32
    %c0_i32_0 = arith.constant 0 : i32
    %c0_i32_1 = arith.constant 0 : i32
    return %c0_i32, %arg0, %c0_i32_0 : i32, i32, i32
  }
  func.func @transform_3(%arg0: i32) -> (i32, i32, i32) {
    %c0_i32 = arith.constant 0 : i32
    %c0_i32_0 = arith.constant 0 : i32
    %c0_i32_1 = arith.constant 0 : i32
    return %c0_i32, %arg0, %c0_i32_0 : i32, i32, i32
  }
  func.func @transform_4(%arg0: i32) -> (i32, i32) {
    %c0_i32 = arith.constant 0 : i32
    %c0_i32_0 = arith.constant 0 : i32
    return %arg0, %c0_i32 : i32, i32
  }
}

</mosaic_0001>

<bundles_post_ra>
// kernel: a_call__.1
= control target key start
LH: loop header
LB: loop body
LE: loop exit
PB: predicated region body
PF: predicated region fallthrough
CT: control target
= control target key end

     0   :  { %v68_v5 = vmov 0.0   ;;  %s109_s0 = inlined_call_operand.vmem [shape: s32[1,4,128], index: 0, kind: input, shape index: {}]   ;;  %s110_s1 = inlined_call_operand.vmem [shape: f32[1,4,128], index: 1, kind: input, shape index: {}]   ;;  %s111_s2 = inlined_call_operand.vmem [shape: f32[1,4,128], index: 2, kind: input, shape index: {}]   ;;  %s112_s4 = inlined_call_operand.vmem [shape: f32[4,128], index: 4, kind: output, shape index: {1}]   ;;  %s113_s3 = inlined_call_operand.vmem [shape: f32[1,4,128], index: 3, kind: output, shape index: {0}]  }
   0x1   :  { %v16_v0 = vld [vmem:[%s109_s0] sm:$0xf] }
   0x2   :  { %v17_v1 = vld [vmem:[%s110_s1] sm:$0xf]  ;;  %vm19_vm0 = vcmp.ge.s32.totalorder %v16_v0, 0 }
   0x3   :  { %v18_v2 = vld [vmem:[%s111_s2] sm:$0xf]  ;;  %v22_v3 = vmul.f32 5000.0, %v17_v1  ;;  %v59_v6 = vsel %vm19_vm0, 1.0, %v68_v5 }
   0x4   :  { %v27_v4 = vsub.f32 100.0, %v18_v2 }
   0x5   :  { %62 = vtanh.f32 %v22_v3 }
   0x6   :  { %v28_v7 = vmul.f32 0.01010101, %v27_v4 }
   0x8   :  { %v29_v8 = vmul.f32 %v59_v6, %v28_v7 }
   0xa   :  { %v60_v9 = vadd.f32 -1e-10, %v29_v8 }
   0xc   :  { %v32_v10 = vmul.f32 10000.0, %v60_v9 }
   0xe   :  { %v33_v11 = vand.u32 2147483647, %v32_v10  ;;  %vm37_vm1 = vcmp.lt.f32.partialorder %v32_v10, 0.0 }
  0x10   :  { %v34_v12 = vsub.f32 0.0, %v33_v11 }
  0x12   :  { %v35_v13 = vmul.f32 1.442695, %v34_v12  ;;  %v63_v14 = vpop.eup %62 }
  0x13   :  { %v24_v15 = vmul.f32 0.5, %v63_v14 }
  0x14   :  { %64 = vpow2.f32 %v35_v13 }
  0x15   :  { %v25_v16 = vsub.f32 0.5, %v24_v15 }
  0x17   :  { %v26_v17 = vmul.f32 %v59_v6, %v25_v16 }
  0x19   :  { %v30_v18 = vsub.f32 1.0, %v26_v17 }
  0x1b   :  { %v49_v19 = vsub.f32 1.0, %v30_v18 }
  0x1d   :  { %50 = vst [vmem:[%s112_s4] sm:$0xf] %v49_v19 }
  0x21   :  { %v65_v20 = vpop.eup %64 }
  0x22   :  { %v38_v21 = vsel %vm37_vm1, %v65_v20, 1.0  ;;  %v40_v22 = vsel %vm37_vm1, 1.0, %v65_v20 }
  0x23   :  { %v39_v23 = vmul.f32 %v38_v21, %v26_v17  ;;  %v41_v24 = vmax.f32 %v40_v22, 1e-10 }
  0x25   :  { %v42_v25 = vadd.f32 %v41_v24, %v39_v23 }
  0x27   :  { %66 = vrcp.f32 %v42_v25 }
  0x34   :  { %v67_v26 = vpop.eup %66 }
  0x35   :  { %v44_v27 = vmul.f32 %v67_v26, %v42_v25 }
  0x37   :  { %v45_v28 = vsub.f32 2.0, %v44_v27 }
  0x39   :  { %v46_v29 = vmul.f32 %v67_v26, %v45_v28 }
  0x3b   :  { %v47_v30 = vmul.f32 %v46_v29, %v39_v23 }
  0x3d   :  { %48 = vst [vmem:[%s113_s3] sm:$0xf] %v47_v30 }

</bundles_post_ra>
